<compile_context>
chip_gen: v5e
topology: v5e:2x2
jax: 0.10.0
libtpu: 0.0.40
codegen_flags: <defaults>
</compile_context>

<pallas_src>
import jax
import jax.numpy as jnp
from jax import lax
from jax.experimental import pallas as pl
from jax.experimental.pallas import tpu as pltpu


def _round_up(x, m):
    return ((x + m - 1) // m) * m


def _cdiv(a, b):
    return (a + b - 1) // b


def _device_kind():
    try:
        return jax.devices()[0].device_kind.lower()
    except Exception:  # pragma: no cover
        return ""


def _make_lcritic_kernel(num_layers, mm_dtype):
    """Kernel body for an MLP with `num_layers` Linear+ReLU layers."""
    # Contract the feature (last) dim of both operands:
    #   (H, K) . (tile_b, K) -> (H, tile_b)   ==  W^T @ x^T   (batch on lanes).
    feat_dn = (((1,), (1,)), ((), ()))

    def kernel(*refs):
        # refs = (obs, act, w1a_t, w1b_t, b1, [w_t, b] * (num_layers-1), out)
        obs_ref, act_ref = refs[0], refs[1]
        w1a_ref, w1b_ref, b1_ref = refs[2], refs[3], refs[4]
        layer_refs = refs[5:-1]
        out_ref = refs[-1]

        # Layer 1: relu(W1a^T obs^T + W1b^T act^T + b1); f32 accumulation.
        h = lax.dot_general(w1a_ref[...], obs_ref[...].astype(mm_dtype),
                            dimension_numbers=feat_dn,
                            preferred_element_type=jnp.float32)
        h = h + lax.dot_general(w1b_ref[...], act_ref[...].astype(mm_dtype),
                                dimension_numbers=feat_dn,
                                preferred_element_type=jnp.float32)
        h = jnp.maximum(h + b1_ref[...], 0.0)

        # Remaining layers (statically unrolled): relu(W_l^T h + b_l).
        for li in range(num_layers - 1):
            w_ref = layer_refs[2 * li]
            b_ref = layer_refs[2 * li + 1]
            h = jnp.dot(w_ref[...], h.astype(mm_dtype),
                        preferred_element_type=jnp.float32)
            h = jnp.maximum(h + b_ref[...], 0.0)

        # Lyapunov value: sum of squares over features (sublane axis)
        # -> lane-dense (1, tile_b) output block.
        out_ref[...] = jnp.sum(h * h, axis=0, keepdims=True).astype(out_ref.dtype)

    return kernel


def lcritic_forward(obs, act, params, *, tile_b=None, use_bf16=None,
                    vmem_budget_bytes=None):
    """Pallas implementation of LCritic.forward.

    Args:
        obs: (B, obs_dim) array (any float dtype; streamed as-is).
        act: (B, act_dim) array.
        params: list of (w, b) per Linear layer; w: (fan_in, fan_out), b: (fan_out,).
        tile_b: batch (lane) tile width; None -> derived from the VMEM budget.
        use_bf16: bf16 MXU operands; None -> True on v6e/v7x, False on v5e.
        vmem_budget_bytes: VMEM budget for tile sizing; None -> per-generation.

    Returns:
        (B,) float32 Lyapunov values.
    """
    B, obs_dim = obs.shape
    b2, act_dim = act.shape
    assert b2 == B, "obs and act must share the batch dimension"
    weights = [w for (w, _) in params]
    biases = [b for (_, b) in params]
    num_layers = len(weights)
    d_in = obs_dim + act_dim
    assert weights[0].shape[0] == d_in, "first layer fan_in must be obs_dim + act_dim"

    kind = _device_kind()
    is_v7 = "v7" in kind
    if use_bf16 is None:
        # bf16 MXU operands on v6e/v7x; keep f32 operands on v5e (tighter accuracy).
        # All accumulation / bias / ReLU / square-sum stay f32 on every chip.
        use_bf16 = not ("v5 lite" in kind or "v5e" in kind or "v5litepod" in kind)
    mm_dtype = jnp.bfloat16 if use_bf16 else jnp.float32

    # --- Parameters: split/transpose/cast once (tiny, VMEM-resident).
    w1 = weights[0].astype(mm_dtype)
    w1a_t = jnp.transpose(w1[:obs_dim])                    # (H1, obs_dim)
    w1b_t = jnp.transpose(w1[obs_dim:])                    # (H1, act_dim)
    b1 = biases[0].astype(jnp.float32).reshape(-1, 1)      # (H1, 1)
    rest = []
    for w, b in zip(weights[1:], biases[1:]):
        rest.append(jnp.transpose(w.astype(mm_dtype)))         # (H_out, H_in)
        rest.append(b.astype(jnp.float32).reshape(-1, 1))      # (H_out, 1)

    widths = [w.shape[1] for w in weights]
    obs_item = jnp.dtype(obs.dtype).itemsize
    act_item = jnp.dtype(act.dtype).itemsize
    mm_item = jnp.dtype(mm_dtype).itemsize
    param_bytes = sum(int(w.size) * mm_item + int(b.size) * 4
                      for w, b in zip(weights, biases))

    # --- Honest per-batch-row VMEM bytes (lane/sublane padding aware).
    LANE = 128
    per_row = 2 * LANE * (obs_item + act_item)             # streamed obs/act blocks (2 buffers, lane-padded)
    per_row += 2 * 8 * 4                                   # (1, tile_b) f32 out block (2 buffers, sublane-padded)
    if use_bf16:
        per_row += 2 * LANE * mm_item                      # in-kernel bf16 copies of the obs/act blocks
    per_row += d_in * (4 + mm_item)                        # transposed x^T working tiles
    per_row += sum(widths) * (4 + (mm_item if use_bf16 else 0))   # activations (f32) + bf16 casts

    # --- Batch tile from the per-generation VMEM budget.
    if vmem_budget_bytes is None:
        vmem_budget_bytes = (28 << 20) if is_v7 else (56 << 20)
    if tile_b is None:
        avail = max(int(vmem_budget_bytes) - 2 * param_bytes - (1 << 20), 1 << 20)
        t = max(128, min(8192, (avail // per_row) // 128 * 128))
    else:
        t = _round_up(max(128, int(tile_b)), 128)
    # >= 2 grid steps when the batch allows it (v7x megacore + DMA/compute overlap),
    # and never bigger than the (lane-rounded) batch itself.
    t = min(t, max(128, _round_up(_cdiv(B, 2), 128)))
    t = min(t, _round_up(B, 128))
    tile_b = int(t)
    n_tiles = _cdiv(B, tile_b)

    footprint = 2 * param_bytes + per_row * tile_b + (1 << 20)   # + Mosaic internal scratch
    ceiling = (60 << 20) if is_v7 else (100 << 20)
    vmem_limit = int(min(ceiling, max(16 << 20, int(footprint * 1.3))))

    kernel = _make_lcritic_kernel(num_layers, mm_dtype)
    # Output slab padded to whole tiles (keeps every output store lane-dense and
    # unmasked); the padded columns hold garbage and are sliced off below.
    out_shape = jax.ShapeDtypeStruct((1, n_tiles * tile_b), jnp.float32)

    def run(resident_mode):
        def resident(arr):
            if resident_mode is None:
                return pl.BlockSpec(arr.shape, lambda i: (0, 0))
            return pl.BlockSpec(arr.shape, lambda i: (0, 0),
                                pipeline_mode=resident_mode)

        in_specs = [
            pl.BlockSpec((tile_b, obs_dim), lambda i: (i, 0)),   # contiguous HBM slab
            pl.BlockSpec((tile_b, act_dim), lambda i: (i, 0)),
            resident(w1a_t), resident(w1b_t), resident(b1),
        ] + [resident(a) for a in rest]
        out_specs = pl.BlockSpec((1, tile_b), lambda i: (0, i))

        return pl.pallas_call(
            kernel,
            out_shape=out_shape,
            grid=(n_tiles,),
            in_specs=in_specs,
            out_specs=out_specs,
            compiler_params=pltpu.CompilerParams(
                dimension_semantics=("parallel",),
                vmem_limit_bytes=vmem_limit,
            ),
        )(obs, act, w1a_t, w1b_t, b1, *rest)

    try:
        # Grid-invariant params never re-DMA; single-buffer them to halve their footprint.
        out = run(pl.Buffered(1))
    except Exception:
        out = run(None)   # fallback: default double-buffering of the resident params

    return out[0, :B]     # (B,) -- cheap slice off the lane-dense slab


def init_lcritic_params(key, obs_dim, act_dim, hidden_sizes):
    """Deterministic init mirroring nn.Linear defaults (U[-1/sqrt(fan_in), +])."""
    sizes = [obs_dim + act_dim] + list(hidden_sizes)
    params = []
    for fan_in, fan_out in zip(sizes[:-1], sizes[1:]):
        key, kw, kb = jax.random.split(key, 3)
        lim = 1.0 / (fan_in ** 0.5)
        w = jax.random.uniform(kw, (fan_in, fan_out), jnp.float32, -lim, lim)
        b = jax.random.uniform(kb, (fan_out,), jnp.float32, -lim, lim)
        params.append((w, b))
    return params


def _reference_forward(obs, act, params):
    """Pure-JAX reference (matches the PyTorch module)."""
    h = jnp.concatenate([obs, act], axis=-1)
    for w, b in params:
        h = jnp.maximum(h @ w + b, 0.0)
    return jnp.sum(h * h, axis=-1)


if __name__ == "__main__":
    obs_dim, act_dim = 8, 4
    hidden_sizes = [32, 32]

    key = jax.random.PRNGKey(0)
    k_obs, k_act, k_params = jax.random.split(key, 3)
    params = init_lcritic_params(k_params, obs_dim, act_dim, hidden_sizes)

    # 1) Small batch, f32 operands (single boundary tile: block larger than batch).
    B = 8
    obs = jax.random.normal(k_obs, (B, obs_dim), jnp.float32)
    act = jax.random.normal(k_act, (B, act_dim), jnp.float32)
    out = lcritic_forward(obs, act, params, use_bf16=False)
    jax.block_until_ready(out)
    ref = _reference_forward(obs, act, params)
    assert out.shape == (B,)
    assert jnp.allclose(out, ref, rtol=1e-4, atol=1e-4), "f32 small-batch mismatch"

    # 2) Multi-tile batch with a partial last block (grid=2, "parallel" axis), f32.
    B2 = 384
    obs2 = jax.random.normal(jax.random.PRNGKey(1), (B2, obs_dim), jnp.float32)
    act2 = jax.random.normal(jax.random.PRNGKey(2), (B2, act_dim), jnp.float32)
    out2 = lcritic_forward(obs2, act2, params, tile_b=256, use_bf16=False)
    jax.block_until_ready(out2)
    ref2 = _reference_forward(obs2, act2, params)
    assert out2.shape == (B2,)
    assert jnp.allclose(out2, ref2, rtol=1e-4, atol=1e-4), "f32 multi-tile mismatch"

    # 3) Auto tile size + generation-gated bf16 MXU operands (f32 accumulation).
    out3 = lcritic_forward(obs2, act2, params)
    jax.block_until_ready(out3)
    assert out3.shape == (B2,)
    assert jnp.allclose(out3, ref2, rtol=5e-2, atol=1e-2), "auto/bf16 mismatch"

    print("KERNEL_OK")
</pallas_src>

<mosaic_0001>
module attributes {stable_mosaic.version = 11 : i64} {
  func.func @kernel(%arg0: i32, %arg1: memref<128x8xf32, #tpu.memory_space<vmem>>, %arg2: memref<128x4xf32, #tpu.memory_space<vmem>>, %arg3: memref<32x8xf32, #tpu.memory_space<vmem>>, %arg4: memref<32x4xf32, #tpu.memory_space<vmem>>, %arg5: memref<32x1xf32, #tpu.memory_space<vmem>>, %arg6: memref<32x32xf32, #tpu.memory_space<vmem>>, %arg7: memref<32x1xf32, #tpu.memory_space<vmem>>, %arg8: memref<1x128xf32, #tpu.memory_space<vmem>>) attributes {dimension_semantics = [#tpu.dimension_semantics<parallel>], iteration_bounds = array<i64: 1>, scalar_prefetch = 0 : i64, scratch_operands = 0 : i64, tpu.core_type = #tpu.core_type<tc>, window_params = [{transform_indices = @transform_0, window_bounds = array<i64: 128, 8>}, {transform_indices = @transform_1, window_bounds = array<i64: 128, 4>}, {pipeline_mode = #tpu.pipeline_mode<synchronous>, transform_indices = @transform_2, window_bounds = array<i64: 32, 8>}, {pipeline_mode = #tpu.pipeline_mode<synchronous>, transform_indices = @transform_3, window_bounds = array<i64: 32, 4>}, {pipeline_mode = #tpu.pipeline_mode<synchronous>, transform_indices = @transform_4, window_bounds = array<i64: 32, 1>}, {pipeline_mode = #tpu.pipeline_mode<synchronous>, transform_indices = @transform_5, window_bounds = array<i64: 32, 32>}, {pipeline_mode = #tpu.pipeline_mode<synchronous>, transform_indices = @transform_6, window_bounds = array<i64: 32, 1>}, {transform_indices = @transform_7, window_bounds = array<i64: 1, 128>}]} {
    %c0 = arith.constant 0 : index
    %c0_0 = arith.constant 0 : index
    %0 = vector.load %arg3[%c0, %c0_0] : memref<32x8xf32, #tpu.memory_space<vmem>>, vector<32x8xf32>
    %c0_1 = arith.constant 0 : index
    %c0_2 = arith.constant 0 : index
    %1 = vector.load %arg1[%c0_1, %c0_2] : memref<128x8xf32, #tpu.memory_space<vmem>>, vector<128x8xf32>
    %cst = arith.constant dense<0.000000e+00> : vector<32x128xf32>
    %2 = tpu.matmul %0, %1, %cst {dimension_numbers = #tpu.dot_dimension_numbers<[1], [1], [0], [0], [0, 0, 1, 0], [], []>} : vector<32x8xf32>, vector<128x8xf32>, vector<32x128xf32> -> vector<32x128xf32>
    %c0_3 = arith.constant 0 : index
    %c0_4 = arith.constant 0 : index
    %3 = vector.load %arg4[%c0_3, %c0_4] : memref<32x4xf32, #tpu.memory_space<vmem>>, vector<32x4xf32>
    %c0_5 = arith.constant 0 : index
    %c0_6 = arith.constant 0 : index
    %4 = vector.load %arg2[%c0_5, %c0_6] : memref<128x4xf32, #tpu.memory_space<vmem>>, vector<128x4xf32>
    %cst_7 = arith.constant dense<0.000000e+00> : vector<32x128xf32>
    %5 = tpu.matmul %3, %4, %cst_7 {dimension_numbers = #tpu.dot_dimension_numbers<[1], [1], [0], [0], [0, 0, 1, 0], [], []>} : vector<32x4xf32>, vector<128x4xf32>, vector<32x128xf32> -> vector<32x128xf32>
    %6 = arith.addf %2, %5 : vector<32x128xf32>
    %c0_8 = arith.constant 0 : index
    %c0_9 = arith.constant 0 : index
    %7 = vector.load %arg5[%c0_8, %c0_9] : memref<32x1xf32, #tpu.memory_space<vmem>>, vector<32x1xf32>
    %8 = vector.broadcast %7 : vector<32x1xf32> to vector<32x128xf32>
    %9 = arith.addf %6, %8 : vector<32x128xf32>
    %cst_10 = arith.constant 0.000000e+00 : f32
    %10 = vector.broadcast %cst_10 : f32 to vector<32x128xf32>
    %11 = arith.maximumf %9, %10 : vector<32x128xf32>
    %c0_11 = arith.constant 0 : index
    %c0_12 = arith.constant 0 : index
    %12 = vector.load %arg6[%c0_11, %c0_12] : memref<32x32xf32, #tpu.memory_space<vmem>>, vector<32x32xf32>
    %cst_13 = arith.constant dense<0.000000e+00> : vector<32x128xf32>
    %13 = tpu.matmul %12, %11, %cst_13 {dimension_numbers = #tpu.dot_dimension_numbers<[1], [0], [0], [1], [0, 0, 1, 1], [], []>} : vector<32x32xf32>, vector<32x128xf32>, vector<32x128xf32> -> vector<32x128xf32>
    %c0_14 = arith.constant 0 : index
    %c0_15 = arith.constant 0 : index
    %14 = vector.load %arg7[%c0_14, %c0_15] : memref<32x1xf32, #tpu.memory_space<vmem>>, vector<32x1xf32>
    %15 = vector.broadcast %14 : vector<32x1xf32> to vector<32x128xf32>
    %16 = arith.addf %13, %15 : vector<32x128xf32>
    %cst_16 = arith.constant 0.000000e+00 : f32
    %17 = vector.broadcast %cst_16 : f32 to vector<32x128xf32>
    %18 = arith.maximumf %16, %17 : vector<32x128xf32>
    %19 = arith.mulf %18, %18 : vector<32x128xf32>
    %cst_17 = arith.constant dense<0.000000e+00> : vector<128xf32>
    %20 = vector.multi_reduction <add>, %19, %cst_17 [0] : vector<32x128xf32> to vector<128xf32>
    %21 = vector.shape_cast %20 : vector<128xf32> to vector<1x128xf32>
    %c0_18 = arith.constant 0 : index
    %c0_19 = arith.constant 0 : index
    %22 = vector.load %arg8[%c0_18, %c0_19] : memref<1x128xf32, #tpu.memory_space<vmem>>, vector<1x128xf32>
    tpu.vector_store %arg8[%c0_18, %c0_19], %21 {strides = array<i32>} : memref<1x128xf32, #tpu.memory_space<vmem>>, vector<1x128xf32>,
    return
  }
  func.func @transform_0(%arg0: i32) -> (i32, i32) {
    %c0_i32 = arith.constant 0 : i32
    %c0_i32_0 = arith.constant 0 : i32
    return %arg0, %c0_i32 : i32, i32
  }
  func.func @transform_1(%arg0: i32) -> (i32, i32) {
    %c0_i32 = arith.constant 0 : i32
    %c0_i32_0 = arith.constant 0 : i32
    return %arg0, %c0_i32 : i32, i32
  }
  func.func @transform_2(%arg0: i32) -> (i32, i32) {
    %c0_i32 = arith.constant 0 : i32
    %c0_i32_0 = arith.constant 0 : i32
    %c0_i32_1 = arith.constant 0 : i32
    return %c0_i32, %c0_i32_0 : i32, i32
  }
  func.func @transform_3(%arg0: i32) -> (i32, i32) {
    %c0_i32 = arith.constant 0 : i32
    %c0_i32_0 = arith.constant 0 : i32
    %c0_i32_1 = arith.constant 0 : i32
    return %c0_i32, %c0_i32_0 : i32, i32
  }
  func.func @transform_4(%arg0: i32) -> (i32, i32) {
    %c0_i32 = arith.constant 0 : i32
    %c0_i32_0 = arith.constant 0 : i32
    %c0_i32_1 = arith.constant 0 : i32
    return %c0_i32, %c0_i32_0 : i32, i32
  }
  func.func @transform_5(%arg0: i32) -> (i32, i32) {
    %c0_i32 = arith.constant 0 : i32
    %c0_i32_0 = arith.constant 0 : i32
    %c0_i32_1 = arith.constant 0 : i32
    return %c0_i32, %c0_i32_0 : i32, i32
  }
  func.func @transform_6(%arg0: i32) -> (i32, i32) {
    %c0_i32 = arith.constant 0 : i32
    %c0_i32_0 = arith.constant 0 : i32
    %c0_i32_1 = arith.constant 0 : i32
    return %c0_i32, %c0_i32_0 : i32, i32
  }
  func.func @transform_7(%arg0: i32) -> (i32, i32) {
    %c0_i32 = arith.constant 0 : i32
    %c0_i32_0 = arith.constant 0 : i32
    return %c0_i32, %arg0 : i32, i32
  }
}

module attributes {stable_mosaic.version = 11 : i64} {
  func.func @kernel(%arg0: i32, %arg1: memref<128x8xf32, #tpu.memory_space<vmem>>, %arg2: memref<128x4xf32, #tpu.memory_space<vmem>>, %arg3: memref<32x8xf32, #tpu.memory_space<vmem>>, %arg4: memref<32x4xf32, #tpu.memory_space<vmem>>, %arg5: memref<32x1xf32, #tpu.memory_space<vmem>>, %arg6: memref<32x32xf32, #tpu.memory_space<vmem>>, %arg7: memref<32x1xf32, #tpu.memory_space<vmem>>, %arg8: memref<1x128xf32, #tpu.memory_space<vmem>>) attributes {dimension_semantics = [#tpu.dimension_semantics<parallel>], iteration_bounds = array<i64: 1>, scalar_prefetch = 0 : i64, scratch_operands = 0 : i64, tpu.core_type = #tpu.core_type<tc>, window_params = [{transform_indices = @transform_0, window_bounds = array<i64: 128, 8>}, {transform_indices = @transform_1, window_bounds = array<i64: 128, 4>}, {pipeline_mode = #tpu.pipeline_mode<synchronous>, transform_indices = @transform_2, window_bounds = array<i64: 32, 8>}, {pipeline_mode = #tpu.pipeline_mode<synchronous>, transform_indices = @transform_3, window_bounds = array<i64: 32, 4>}, {pipeline_mode = #tpu.pipeline_mode<synchronous>, transform_indices = @transform_4, window_bounds = array<i64: 32, 1>}, {pipeline_mode = #tpu.pipeline_mode<synchronous>, transform_indices = @transform_5, window_bounds = array<i64: 32, 32>}, {pipeline_mode = #tpu.pipeline_mode<synchronous>, transform_indices = @transform_6, window_bounds = array<i64: 32, 1>}, {transform_indices = @transform_7, window_bounds = array<i64: 1, 128>}]} {
    %c0 = arith.constant 0 : index
    %c0_0 = arith.constant 0 : index
    %0 = vector.load %arg3[%c0, %c0_0] : memref<32x8xf32, #tpu.memory_space<vmem>>, vector<32x8xf32>
    %c0_1 = arith.constant 0 : index
    %c0_2 = arith.constant 0 : index
    %1 = vector.load %arg1[%c0_1, %c0_2] : memref<128x8xf32, #tpu.memory_space<vmem>>, vector<128x8xf32>
    %cst = arith.constant dense<0.000000e+00> : vector<32x128xf32>
    %2 = tpu.matmul %0, %1, %cst {dimension_numbers = #tpu.dot_dimension_numbers<[1], [1], [0], [0], [0, 0, 1, 0], [], []>} : vector<32x8xf32>, vector<128x8xf32>, vector<32x128xf32> -> vector<32x128xf32>
    %c0_3 = arith.constant 0 : index
    %c0_4 = arith.constant 0 : index
    %3 = vector.load %arg4[%c0_3, %c0_4] : memref<32x4xf32, #tpu.memory_space<vmem>>, vector<32x4xf32>
    %c0_5 = arith.constant 0 : index
    %c0_6 = arith.constant 0 : index
    %4 = vector.load %arg2[%c0_5, %c0_6] : memref<128x4xf32, #tpu.memory_space<vmem>>, vector<128x4xf32>
    %cst_7 = arith.constant dense<0.000000e+00> : vector<32x128xf32>
    %5 = tpu.matmul %3, %4, %cst_7 {dimension_numbers = #tpu.dot_dimension_numbers<[1], [1], [0], [0], [0, 0, 1, 0], [], []>} : vector<32x4xf32>, vector<128x4xf32>, vector<32x128xf32> -> vector<32x128xf32>
    %6 = arith.addf %2, %5 : vector<32x128xf32>
    %c0_8 = arith.constant 0 : index
    %c0_9 = arith.constant 0 : index
    %7 = vector.load %arg5[%c0_8, %c0_9] : memref<32x1xf32, #tpu.memory_space<vmem>>, vector<32x1xf32>
    %8 = vector.broadcast %7 : vector<32x1xf32> to vector<32x128xf32>
    %9 = arith.addf %6, %8 : vector<32x128xf32>
    %cst_10 = arith.constant 0.000000e+00 : f32
    %10 = vector.broadcast %cst_10 : f32 to vector<32x128xf32>
    %11 = arith.maximumf %9, %10 : vector<32x128xf32>
    %c0_11 = arith.constant 0 : index
    %c0_12 = arith.constant 0 : index
    %12 = vector.load %arg6[%c0_11, %c0_12] : memref<32x32xf32, #tpu.memory_space<vmem>>, vector<32x32xf32>
    %cst_13 = arith.constant dense<0.000000e+00> : vector<32x128xf32>
    %13 = tpu.matmul %12, %11, %cst_13 {dimension_numbers = #tpu.dot_dimension_numbers<[1], [0], [0], [1], [0, 0, 1, 1], [], []>} : vector<32x32xf32>, vector<32x128xf32>, vector<32x128xf32> -> vector<32x128xf32>
    %c0_14 = arith.constant 0 : index
    %c0_15 = arith.constant 0 : index
    %14 = vector.load %arg7[%c0_14, %c0_15] : memref<32x1xf32, #tpu.memory_space<vmem>>, vector<32x1xf32>
    %15 = vector.broadcast %14 : vector<32x1xf32> to vector<32x128xf32>
    %16 = arith.addf %13, %15 : vector<32x128xf32>
    %cst_16 = arith.constant 0.000000e+00 : f32
    %17 = vector.broadcast %cst_16 : f32 to vector<32x128xf32>
    %18 = arith.maximumf %16, %17 : vector<32x128xf32>
    %19 = arith.mulf %18, %18 : vector<32x128xf32>
    %cst_17 = arith.constant dense<0.000000e+00> : vector<128xf32>
    %20 = vector.multi_reduction <add>, %19, %cst_17 [0] : vector<32x128xf32> to vector<128xf32>
    %21 = vector.shape_cast %20 : vector<128xf32> to vector<1x128xf32>
    %c0_18 = arith.constant 0 : index
    %c0_19 = arith.constant 0 : index
    %22 = vector.load %arg8[%c0_18, %c0_19] : memref<1x128xf32, #tpu.memory_space<vmem>>, vector<1x128xf32>
    tpu.vector_store %arg8[%c0_18, %c0_19], %21 {strides = array<i32>} : memref<1x128xf32, #tpu.memory_space<vmem>>, vector<1x128xf32>,
    return
  }
  func.func @transform_0(%arg0: i32) -> (i32, i32) {
    %c0_i32 = arith.constant 0 : i32
    %c0_i32_0 = arith.constant 0 : i32
    return %arg0, %c0_i32 : i32, i32
  }
  func.func @transform_1(%arg0: i32) -> (i32, i32) {
    %c0_i32 = arith.constant 0 : i32
    %c0_i32_0 = arith.constant 0 : i32
    return %arg0, %c0_i32 : i32, i32
  }
  func.func @transform_2(%arg0: i32) -> (i32, i32) {
    %c0_i32 = arith.constant 0 : i32
    %c0_i32_0 = arith.constant 0 : i32
    %c0_i32_1 = arith.constant 0 : i32
    return %c0_i32, %c0_i32_0 : i32, i32
  }
  func.func @transform_3(%arg0: i32) -> (i32, i32) {
    %c0_i32 = arith.constant 0 : i32
    %c0_i32_0 = arith.constant 0 : i32
    %c0_i32_1 = arith.constant 0 : i32
    return %c0_i32, %c0_i32_0 : i32, i32
  }
  func.func @transform_4(%arg0: i32) -> (i32, i32) {
    %c0_i32 = arith.constant 0 : i32
    %c0_i32_0 = arith.constant 0 : i32
    %c0_i32_1 = arith.constant 0 : i32
    return %c0_i32, %c0_i32_0 : i32, i32
  }
  func.func @transform_5(%arg0: i32) -> (i32, i32) {
    %c0_i32 = arith.constant 0 : i32
    %c0_i32_0 = arith.constant 0 : i32
    %c0_i32_1 = arith.constant 0 : i32
    return %c0_i32, %c0_i32_0 : i32, i32
  }
  func.func @transform_6(%arg0: i32) -> (i32, i32) {
    %c0_i32 = arith.constant 0 : i32
    %c0_i32_0 = arith.constant 0 : i32
    %c0_i32_1 = arith.constant 0 : i32
    return %c0_i32, %c0_i32_0 : i32, i32
  }
  func.func @transform_7(%arg0: i32) -> (i32, i32) {
    %c0_i32 = arith.constant 0 : i32
    %c0_i32_0 = arith.constant 0 : i32
    return %c0_i32, %arg0 : i32, i32
  }
}

</mosaic_0001>

<bundles_post_ra>
// kernel: tpu_custom_call.1
= control target key start
LH: loop header
LB: loop body
LE: loop exit
PB: predicated region body
PF: predicated region fallthrough
CT: control target
= control target key end

     0   :  { %vm67_vm0 = vcmask 31744   ;;  %vm157_vm1 = vcmask 64512   ;;  %s731_s0 = inlined_call_operand.vmem [shape: f32[8,8], index: 0, kind: input, shape index: {}]   ;;  %s732_s1 = inlined_call_operand.vmem [shape: f32[8,4], index: 1, kind: input, shape index: {}]   ;;  %s733_s2 = inlined_call_operand.vmem [shape: f32[32,8], index: 2, kind: input, shape index: {}]   ;;  %s734_s3 = inlined_call_operand.vmem [shape: f32[32,4], index: 3, kind: input, shape index: {}]   ;;  %s735_s4 = inlined_call_operand.vmem [shape: f32[32,1], index: 4, kind: input, shape index: {}]   ;;  %s736_s5 = inlined_call_operand.vmem [shape: f32[32,32], index: 5, kind: input, shape index: {}]   ;;  %s737_s6 = inlined_call_operand.vmem [shape: f32[32,1], index: 6, kind: input, shape index: {}]   ;;  %s738_s7 = inlined_call_operand.hbm [shape: f32[1,128], index: 7, kind: output, shape index: {}]  }
   0x1   :  { %v66_v0 = vld [vmem:[%s732_s1 + $0x78] sm:$0xff]  ;;  %v65_v2 = vld [vmem:[%s732_s1 + $0x70] sm:$0xff]  ;;  %v64_v4 = vld [vmem:[%s732_s1 + $0x68] sm:$0xff] }
   0x2   :  { %v46_v1 = vld [vmem:[%s731_s0 + $0x78] sm:$0xff]  ;;  %383 = vmatpush.xpose.msk.msra.mxu0 %vm67_vm0, %v66_v0  ;;  %v45_v3 = vld [vmem:[%s731_s0 + $0x70] sm:$0xff]  ;;  %427 = vmatpush.xpose.msk.msra.mxu3 %vm67_vm0, %v66_v0  ;;  %v44_v5 = vld [vmem:[%s731_s0 + $0x68] sm:$0xff] }
   0x3   :  { %403 = vmatpush.xpose.msk.msra.mxu1 %vm157_vm1, %v46_v1 }
   0x6   :  { %384 = vmatpush.xpose.msk.msra.mxu0 %vm67_vm0, %v65_v2  ;;  %428 = vmatpush.xpose.msk.msra.mxu3 %vm67_vm0, %v65_v2 }
   0x7   :  { %404 = vmatpush.xpose.msk.msra.mxu1 %vm157_vm1, %v45_v3 }
   0x8   :  { %12 = vsyncpa [#allocation3], 0  ;;  %v63_v6 = vld [vmem:[%s732_s1 + $0x60] sm:$0xff]  ;;  %v62_v8 = vld [vmem:[%s732_s1 + $0x58] sm:$0xff]  ;;  %v474_v21 = vmov 0   ;;  %vm307_vm2 = vcmask 261120  }
   0x9   :  { %v43_v7 = vld [vmem:[%s731_s0 + $0x60] sm:$0xff]  ;;  %v42_v9 = vld [vmem:[%s731_s0 + $0x58] sm:$0xff]  ;;  %v61_v10 = vld [vmem:[%s732_s1 + $0x50] sm:$0xff]  ;;  %446 = vset.pattern.permute.xlu1 %v474_v21  ;;  %445 = vset.pattern.permute.xlu0 %v474_v21  ;;  %s374_s9 = sshll.u32 %s738_s7, 4  ;;  %s375_s9 = int_to_ptr.hbm [resolvable:$true] %s374_s9 }
   0xa   :  { %385 = vmatpush.xpose.msk.msra.mxu0 %vm67_vm0, %v64_v4  ;;  %429 = vmatpush.xpose.msk.msra.mxu3 %vm67_vm0, %v64_v4  ;;  %v41_v11 = vld [vmem:[%s731_s0 + $0x50] sm:$0xff]  ;;  %v60_v12 = vld [vmem:[%s732_s1 + $0x48] sm:$0xff]  ;;  %v59_v14 = vld [vmem:[%s732_s1 + $0x40] sm:$0xff] }
   0xb   :  { %405 = vmatpush.xpose.msk.msra.mxu1 %vm157_vm1, %v44_v5  ;;  %v40_v13 = vld [vmem:[%s731_s0 + $0x48] sm:$0xff]  ;;  %v39_v15 = vld [vmem:[%s731_s0 + $0x40] sm:$0xff]  ;;  %v58_v16 = vld [vmem:[%s732_s1 + $0x38] sm:$0xff]  ;;  %447 = vset.pattern.permute.xlu2 %v474_v21 }
   0xc   :  { %v38_v17 = vld [vmem:[%s731_s0 + $0x38] sm:$0xff]  ;;  %v248_v18 = vld [vmem:[%s735_s4 + $0x8] sm:$0xff]  ;;  %v57_v19 = vld [vmem:[%s732_s1 + $0x30] sm:$0xff] }
   0xd   :  { %v37_v20 = vld [vmem:[%s731_s0 + $0x30] sm:$0xff]  ;;  %258 = vperm.xlu1 %446, %v248_v18   ;;  %v56_v22 = vld [vmem:[%s732_s1 + $0x28] sm:$0xff]  ;;  %v247_v24 = vld [vmem:[%s735_s4] sm:$0xff] }
   0xe   :  { %386 = vmatpush.xpose.msk.msra.mxu0 %vm67_vm0, %v63_v6  ;;  %430 = vmatpush.xpose.msk.msra.mxu3 %vm67_vm0, %v63_v6  ;;  %v36_v23 = vld [vmem:[%s731_s0 + $0x28] sm:$0xff]  ;;  %v250_v25 = vld [vmem:[%s735_s4 + $0x18] sm:$0xff]  ;;  %v55_v26 = vld [vmem:[%s732_s1 + $0x20] sm:$0xff] }
   0xf   :  { %406 = vmatpush.xpose.msk.msra.mxu1 %vm157_vm1, %v43_v7  ;;  %v35_v27 = vld [vmem:[%s731_s0 + $0x20] sm:$0xff]  ;;  %268 = vperm.xlu0 %445, %v250_v25   ;;  %v54_v28 = vld [vmem:[%s732_s1 + $0x18] sm:$0xff]  ;;  %v249_v30 = vld [vmem:[%s735_s4 + $0x10] sm:$0xff] }
  0x10   :  { %v34_v29 = vld [vmem:[%s731_s0 + $0x18] sm:$0xff]  ;;  %v53_v31 = vld [vmem:[%s732_s1 + $0x10] sm:$0xff]  ;;  %v52_v33 = vld [vmem:[%s732_s1 + $0x8] sm:$0xff] }
  0x11   :  { %v33_v32 = vld [vmem:[%s731_s0 + $0x10] sm:$0xff]  ;;  %v32_v34 = vld [vmem:[%s731_s0 + $0x8] sm:$0xff]  ;;  %v286_v36 = vld [vmem:[%s737_s6 + $0x18] sm:$0xff] }
  0x12   :  { %387 = vmatpush.xpose.msk.msra.mxu0 %vm67_vm0, %v62_v8  ;;  %431 = vmatpush.xpose.msk.msra.mxu3 %vm67_vm0, %v62_v8  ;;  %v285_v35 = vld [vmem:[%s737_s6 + $0x10] sm:$0xff]  ;;  %v51_v37 = vld [vmem:[%s732_s1] sm:$0xff]  ;;  %v48_v42 = vld [vmem:[%s734_s3 + $0x8] sm:$0xff] }
  0x13   :  { %407 = vmatpush.xpose.msk.msra.mxu1 %vm157_vm1, %v42_v9  ;;  %v31_v38 = vld [vmem:[%s731_s0] sm:$0xff]  ;;  %v49_v41 = vld [vmem:[%s734_s3 + $0x10] sm:$0xff]  ;;  %v28_v43 = vld [vmem:[%s733_s2 + $0x8] sm:$0xff] }
  0x14   :  { %v47_v39 = vld [vmem:[%s734_s3] sm:$0xff]  ;;  %v50_v44 = vld [vmem:[%s734_s3 + $0x18] sm:$0xff]  ;;  %v29_v45 = vld [vmem:[%s733_s2 + $0x10] sm:$0xff] }
  0x15   :  { %253 = vperm.xlu1 %446, %v247_v24   ;;  %v27_v40 = vld [vmem:[%s733_s2] sm:$0xff]  ;;  %v30_v46 = vld [vmem:[%s733_s2 + $0x18] sm:$0xff]  ;;  %v284_v9 = vld [vmem:[%s737_s6 + $0x8] sm:$0xff] }
  0x16   :  { %388 = vmatpush.xpose.msk.msra.mxu0 %vm67_vm0, %v61_v10  ;;  %432 = vmatpush.xpose.msk.msra.mxu3 %vm67_vm0, %v61_v10  ;;  %v283_v3 = vld [vmem:[%s737_s6] sm:$0xff]  ;;  %v280_v10 = vld [vmem:[%s736_s5 + $0x8] sm:$0xff] }
  0x17   :  { %408 = vmatpush.xpose.msk.msra.mxu1 %vm157_vm1, %v41_v11  ;;  %263 = vperm.xlu0 %445, %v249_v30   ;;  %v279_v8 = vld [vmem:[%s736_s5] sm:$0xff]  ;;  %v281_v11 = vld [vmem:[%s736_s5 + $0x10] sm:$0xff] }
  0x18   :  { %289 = vperm.xlu2 %447, %v283_v3  }
  0x1a   :  { %389 = vmatpush.xpose.msk.msra.mxu0 %vm67_vm0, %v60_v12  ;;  %433 = vmatpush.xpose.msk.msra.mxu3 %vm67_vm0, %v60_v12  ;;  %v282_v12 = vld [vmem:[%s736_s5 + $0x18] sm:$0xff]  ;;  %s475_s5 = smov [#allocation2]  }
  0x1b   :  { %409 = vmatpush.xpose.msk.msra.mxu1 %vm157_vm1, %v40_v13  ;;  %s372_s6 = sshll.u32 %s475_s5, 4  ;;  %s373_s6 = int_to_ptr.vmem [resolvable:$true] %s372_s6 }
  0x1d   :  { %304 = vperm.xlu1 %446, %v286_v36  }
  0x1e   :  { %390 = vmatpush.xpose.msk.msra.mxu0 %vm67_vm0, %v59_v14  ;;  %434 = vmatpush.xpose.msk.msra.mxu3 %vm67_vm0, %v59_v14 }
  0x1f   :  { %410 = vmatpush.xpose.msk.msra.mxu1 %vm157_vm1, %v39_v15  ;;  %299 = vperm.xlu0 %445, %v285_v35  }
  0x20   :  { %294 = vperm.xlu2 %447, %v284_v9  }
  0x22   :  { %391 = vmatpush.xpose.msk.msra.mxu0 %vm67_vm0, %v58_v16  ;;  %435 = vmatpush.xpose.msk.msra.mxu3 %vm67_vm0, %v58_v16 }
  0x23   :  { %411 = vmatpush.xpose.msk.msra.mxu1 %vm157_vm1, %v38_v17 }
  0x26   :  { %392 = vmatpush.xpose.msk.msra.mxu0 %vm67_vm0, %v57_v19  ;;  %436 = vmatpush.xpose.msk.msra.mxu3 %vm67_vm0, %v57_v19 }
  0x27   :  { %412 = vmatpush.xpose.msk.msra.mxu1 %vm157_vm1, %v37_v20 }
  0x2a   :  { %393 = vmatpush.xpose.msk.msra.mxu0 %vm67_vm0, %v56_v22  ;;  %437 = vmatpush.xpose.msk.msra.mxu3 %vm67_vm0, %v56_v22 }
  0x2b   :  { %413 = vmatpush.xpose.msk.msra.mxu1 %vm157_vm1, %v36_v23 }
  0x2e   :  { %394 = vmatpush.xpose.msk.msra.mxu0 %vm67_vm0, %v55_v26  ;;  %438 = vmatpush.xpose.msk.msra.mxu3 %vm67_vm0, %v55_v26 }
  0x2f   :  { %414 = vmatpush.xpose.msk.msra.mxu1 %vm157_vm1, %v35_v27 }
  0x32   :  { %395 = vmatpush.xpose.msk.msra.mxu0 %vm67_vm0, %v54_v28  ;;  %439 = vmatpush.xpose.msk.msra.mxu3 %vm67_vm0, %v54_v28 }
  0x33   :  { %415 = vmatpush.xpose.msk.msra.mxu1 %vm157_vm1, %v34_v29 }
  0x36   :  { %396 = vmatpush.xpose.msk.msra.mxu0 %vm67_vm0, %v53_v31  ;;  %440 = vmatpush.xpose.msk.msra.mxu3 %vm67_vm0, %v53_v31 }
  0x37   :  { %416 = vmatpush.xpose.msk.msra.mxu1 %vm157_vm1, %v33_v32 }
  0x3a   :  { %397 = vmatpush.xpose.msk.msra.mxu0 %vm67_vm0, %v52_v33  ;;  %441 = vmatpush.xpose.msk.msra.mxu3 %vm67_vm0, %v52_v33 }
  0x3b   :  { %417 = vmatpush.xpose.msk.msra.mxu1 %vm157_vm1, %v32_v34 }
  0x3e   :  { %398 = vmatpush.xpose.msk.msra.mxu0 %vm67_vm0, %v51_v37  ;;  %442 = vmatpush.xpose.msk.msra.mxu3 %vm67_vm0, %v51_v37 }
  0x3f   :  { %418 = vmatpush.xpose.msk.msra.mxu1 %vm157_vm1, %v31_v38 }
  0x41   :  { %399 = vmatmul.msk.f32.vlgmr.msra.gmra.mxu0 %vm67_vm0, %v47_v39  ;;  %401 = vmatmul.msk.f32.vlgmr.msra.gmra.mxu3 %vm67_vm0, %v49_v41 }
  0x42   :  { %419 = vmatmul.msk.f32.vlgmr.msra.gmra.mxu1 %vm157_vm1, %v27_v40 }
  0x49   :  { %400 = vmatmul.msk.f32.gmra.mxu0 %vm67_vm0, %v48_v42  ;;  %402 = vmatmul.msk.f32.gmra.mxu3 %vm67_vm0, %v50_v44 }
  0x4a   :  { %420 = vmatmul.msk.f32.gmra.mxu1 %vm157_vm1, %v28_v43 }
  0x52   :  { %421 = vmatmul.msk.f32.gmra.mxu1 %vm157_vm1, %v29_v45 }
  0x5a   :  { %422 = vmatmul.msk.f32.gmra.mxu1 %vm157_vm1, %v30_v46 }
  0x72   :  { %v290_v14 = vpop.permute.xlu2 %289 }
  0x7a   :  { %v295_v16 = vpop.permute.xlu2 %294 }
  0x7f   :  { %v259_v53 = vpop.permute.xlu1 %258 }
  0x81   :  { %v269_v51 = vpop.permute.xlu0 %268 }
  0x87   :  { %v254_v0 = vpop.permute.xlu1 %253 }
  0x89   :  { %v264_v60 = vpop.permute.xlu0 %263 }
  0x8f   :  { %v305_v26 = vpop.permute.xlu1 %304 }
  0x91   :  { %v300_v18 = vpop.permute.xlu0 %299 }
  0xbe   :  { %v145_v49 = vpop.f32.mrf.mxu0 }
  0xbf   :  { %v235_v47 = vpop.f32.mrf.mxu1 }
  0xc0   :  { %v236_v61 = vadd.f32 %v235_v47, %v145_v49 }
  0xc2   :  { %v271_v4 = vadd.f32 %v254_v0, %v236_v61 }
  0xc4   :  { %v151_v50 = vpop.f32.mrf.mxu3  ;;  %v275_v7 = vmax.f32 %v271_v4, 0.0 }
  0xc6   :  { %v148_v54 = vpop.f32.mrf.mxu0 }
  0xc7   :  { %v238_v48 = vpop.f32.mrf.mxu1 }
  0xc8   :  { %v239_v58 = vadd.f32 %v238_v48, %v148_v54 }
  0xca   :  { %v272_v2 = vadd.f32 %v259_v53, %v239_v58 }
  0xcc   :  { %v154_v55 = vpop.f32.mrf.mxu3  ;;  %v276_v6 = vmax.f32 %v272_v2, 0.0 }
  0xcf   :  { %v241_v52 = vpop.f32.mrf.mxu1 }
  0xd0   :  { %v242_v56 = vadd.f32 %v241_v52, %v151_v50 }
  0xd2   :  { %v273_v63 = vadd.f32 %v264_v60, %v242_v56 }
  0xd4   :  { %v277_v5 = vmax.f32 %v273_v63, 0.0 }
  0xd7   :  { %v244_v57 = vpop.f32.mrf.mxu1 }
  0xd8   :  { %v245_v59 = vadd.f32 %v244_v57, %v154_v55 }
  0xda   :  { %v274_v62 = vadd.f32 %v269_v51, %v245_v59 }
  0xdc   :  { %v278_v1 = vmax.f32 %v274_v62, 0.0 }
  0xde   :  { %332 = vmatpush.msra.mxu2 %v278_v1 }
  0xe0   :  { %333 = vmatpush.msra.mxu2 %v277_v5 }
  0xe2   :  { %334 = vmatpush.msra.mxu2 %v276_v6 }
  0xe4   :  { %335 = vmatpush.msra.mxu2 %v275_v7 }
  0xe5   :  { %423 = vmatmul.msk.f32.vlgmr.msra.gmra.mxu2 %vm307_vm2, %v279_v8 }
  0xed   :  { %424 = vmatmul.msk.f32.gmra.mxu2 %vm307_vm2, %v280_v10 }
  0xf5   :  { %425 = vmatmul.msk.f32.gmra.mxu2 %vm307_vm2, %v281_v11 }
  0xfd   :  { %426 = vmatmul.msk.f32.gmra.mxu2 %vm307_vm2, %v282_v12 }
 0x168   :  { %v337_v13 = vpop.f32.mrf.mxu2 }
 0x169   :  { %v338_v20 = vadd.f32 %v337_v13, %v290_v14 }
 0x16b   :  { %v349_v23 = vmax.f32 %v338_v20, 0.0 }
 0x16d   :  { %v353_v28 = vmul.f32 %v349_v23, %v349_v23 }
 0x170   :  { %v340_v15 = vpop.f32.mrf.mxu2 }
 0x171   :  { %v341_v17 = vadd.f32 %v340_v15, %v295_v16 }
 0x173   :  { %v350_v22 = vmax.f32 %v341_v17, 0.0 }
 0x175   :  { %v354_v25 = vmul.f32 %v350_v22, %v350_v22 }
 0x177   :  { %v357_v31 = vadd.f32 %v354_v25, %v353_v28 }
 0x178   :  { %v343_v19 = vpop.f32.mrf.mxu2 }
 0x179   :  { %v344_v21 = vadd.f32 %v343_v19, %v300_v18 }
 0x17b   :  { %v351_v24 = vmax.f32 %v344_v21, 0.0 }
 0x17d   :  { %v355_v29 = vmul.f32 %v351_v24, %v351_v24 }
 0x17f   :  { %v358_v33 = vadd.f32 %v357_v31, %v355_v29 }
 0x180   :  { %v346_v27 = vpop.f32.mrf.mxu2 }
 0x181   :  { %v347_v30 = vadd.f32 %v346_v27, %v305_v26 }
 0x183   :  { %v352_v32 = vmax.f32 %v347_v30, 0.0 }
 0x185   :  { %v356_v34 = vmul.f32 %v352_v32, %v352_v32 }
 0x187   :  { %v359_v35 = vadd.f32 %v358_v33, %v356_v34 }
 0x189   :  { %v360_v36 = vrot.slane %v359_v35, 4 }
 0x18b   :  { %v361_v37 = vadd.f32 %v360_v36, %v359_v35 }
 0x18d   :  { %v362_v38 = vrot.slane %v361_v37, 2 }
 0x18f   :  { %v363_v39 = vadd.f32 %v362_v38, %v361_v37 }
 0x191   :  { %v364_v40 = vrot.slane %v363_v39, 1 }
 0x193   :  { %v365_v41 = vadd.f32 %v364_v40, %v363_v39 }
 0x195   :  { %366 = vst [vmem:[#allocation2] sm:$0x1] %v365_v41 }
 0x196   :  { %377 = dma.vmem_to_hbm [thread:$0]  %s373_s6, 16, %s375_s9, [#allocation3]  }
 0x197   :  { %472 = dma.done.wait [#allocation3], 16  }
 0x198   :  { %473 = vsyncadd [#allocation3], 4294967280 }
 0x199   :  { %382 = vsyncpa [#allocation3], 1 }

// kernel: tpu_custom_call.1
= control target key start
LH: loop header
LB: loop body
LE: loop exit
PB: predicated region body
PF: predicated region fallthrough
CT: control target
= control target key end

     0   :  { %vm67_vm0 = vcmask 31744   ;;  %vm157_vm1 = vcmask 64512   ;;  %s731_s0 = inlined_call_operand.vmem [shape: f32[8,8], index: 0, kind: input, shape index: {}]   ;;  %s732_s1 = inlined_call_operand.vmem [shape: f32[8,4], index: 1, kind: input, shape index: {}]   ;;  %s733_s2 = inlined_call_operand.vmem [shape: f32[32,8], index: 2, kind: input, shape index: {}]   ;;  %s734_s3 = inlined_call_operand.vmem [shape: f32[32,4], index: 3, kind: input, shape index: {}]   ;;  %s735_s4 = inlined_call_operand.vmem [shape: f32[32,1], index: 4, kind: input, shape index: {}]   ;;  %s736_s5 = inlined_call_operand.vmem [shape: f32[32,32], index: 5, kind: input, shape index: {}]   ;;  %s737_s6 = inlined_call_operand.vmem [shape: f32[32,1], index: 6, kind: input, shape index: {}]   ;;  %s738_s7 = inlined_call_operand.hbm [shape: f32[1,128], index: 7, kind: output, shape index: {}]  }
   0x1   :  { %v66_v0 = vld [vmem:[%s732_s1 + $0x78] sm:$0xff]  ;;  %v65_v2 = vld [vmem:[%s732_s1 + $0x70] sm:$0xff]  ;;  %v64_v4 = vld [vmem:[%s732_s1 + $0x68] sm:$0xff] }
   0x2   :  { %v46_v1 = vld [vmem:[%s731_s0 + $0x78] sm:$0xff]  ;;  %383 = vmatpush.xpose.msk.msra.mxu0 %vm67_vm0, %v66_v0  ;;  %v45_v3 = vld [vmem:[%s731_s0 + $0x70] sm:$0xff]  ;;  %427 = vmatpush.xpose.msk.msra.mxu3 %vm67_vm0, %v66_v0  ;;  %v44_v5 = vld [vmem:[%s731_s0 + $0x68] sm:$0xff] }
   0x3   :  { %403 = vmatpush.xpose.msk.msra.mxu1 %vm157_vm1, %v46_v1 }
   0x6   :  { %384 = vmatpush.xpose.msk.msra.mxu0 %vm67_vm0, %v65_v2  ;;  %428 = vmatpush.xpose.msk.msra.mxu3 %vm67_vm0, %v65_v2 }
   0x7   :  { %404 = vmatpush.xpose.msk.msra.mxu1 %vm157_vm1, %v45_v3 }
   0x8   :  { %12 = vsyncpa [#allocation3], 0  ;;  %v63_v6 = vld [vmem:[%s732_s1 + $0x60] sm:$0xff]  ;;  %v62_v8 = vld [vmem:[%s732_s1 + $0x58] sm:$0xff]  ;;  %v474_v21 = vmov 0   ;;  %vm307_vm2 = vcmask 261120  }
   0x9   :  { %v43_v7 = vld [vmem:[%s731_s0 + $0x60] sm:$0xff]  ;;  %v42_v9 = vld [vmem:[%s731_s0 + $0x58] sm:$0xff]  ;;  %v61_v10 = vld [vmem:[%s732_s1 + $0x50] sm:$0xff]  ;;  %446 = vset.pattern.permute.xlu1 %v474_v21  ;;  %445 = vset.pattern.permute.xlu0 %v474_v21  ;;  %s374_s9 = sshll.u32 %s738_s7, 4  ;;  %s375_s9 = int_to_ptr.hbm [resolvable:$true] %s374_s9 }
   0xa   :  { %385 = vmatpush.xpose.msk.msra.mxu0 %vm67_vm0, %v64_v4  ;;  %429 = vmatpush.xpose.msk.msra.mxu3 %vm67_vm0, %v64_v4  ;;  %v41_v11 = vld [vmem:[%s731_s0 + $0x50] sm:$0xff]  ;;  %v60_v12 = vld [vmem:[%s732_s1 + $0x48] sm:$0xff]  ;;  %v59_v14 = vld [vmem:[%s732_s1 + $0x40] sm:$0xff] }
   0xb   :  { %405 = vmatpush.xpose.msk.msra.mxu1 %vm157_vm1, %v44_v5  ;;  %v40_v13 = vld [vmem:[%s731_s0 + $0x48] sm:$0xff]  ;;  %v39_v15 = vld [vmem:[%s731_s0 + $0x40] sm:$0xff]  ;;  %v58_v16 = vld [vmem:[%s732_s1 + $0x38] sm:$0xff]  ;;  %447 = vset.pattern.permute.xlu2 %v474_v21 }
   0xc   :  { %v38_v17 = vld [vmem:[%s731_s0 + $0x38] sm:$0xff]  ;;  %v248_v18 = vld [vmem:[%s735_s4 + $0x8] sm:$0xff]  ;;  %v57_v19 = vld [vmem:[%s732_s1 + $0x30] sm:$0xff] }
   0xd   :  { %v37_v20 = vld [vmem:[%s731_s0 + $0x30] sm:$0xff]  ;;  %258 = vperm.xlu1 %446, %v248_v18   ;;  %v56_v22 = vld [vmem:[%s732_s1 + $0x28] sm:$0xff]  ;;  %v247_v24 = vld [vmem:[%s735_s4] sm:$0xff] }
   0xe   :  { %386 = vmatpush.xpose.msk.msra.mxu0 %vm67_vm0, %v63_v6  ;;  %430 = vmatpush.xpose.msk.msra.mxu3 %vm67_vm0, %v63_v6  ;;  %v36_v23 = vld [vmem:[%s731_s0 + $0x28] sm:$0xff]  ;;  %v250_v25 = vld [vmem:[%s735_s4 + $0x18] sm:$0xff]  ;;  %v55_v26 = vld [vmem:[%s732_s1 + $0x20] sm:$0xff] }
   0xf   :  { %406 = vmatpush.xpose.msk.msra.mxu1 %vm157_vm1, %v43_v7  ;;  %v35_v27 = vld [vmem:[%s731_s0 + $0x20] sm:$0xff]  ;;  %268 = vperm.xlu0 %445, %v250_v25   ;;  %v54_v28 = vld [vmem:[%s732_s1 + $0x18] sm:$0xff]  ;;  %v249_v30 = vld [vmem:[%s735_s4 + $0x10] sm:$0xff] }
  0x10   :  { %v34_v29 = vld [vmem:[%s731_s0 + $0x18] sm:$0xff]  ;;  %v53_v31 = vld [vmem:[%s732_s1 + $0x10] sm:$0xff]  ;;  %v52_v33 = vld [vmem:[%s732_s1 + $0x8] sm:$0xff] }
  0x11   :  { %v33_v32 = vld [vmem:[%s731_s0 + $0x10] sm:$0xff]  ;;  %v32_v34 = vld [vmem:[%s731_s0 + $0x8] sm:$0xff]  ;;  %v286_v36 = vld [vmem:[%s737_s6 + $0x18] sm:$0xff] }
  0x12   :  { %387 = vmatpush.xpose.msk.msra.mxu0 %vm67_vm0, %v62_v8  ;;  %431 = vmatpush.xpose.msk.msra.mxu3 %vm67_vm0, %v62_v8  ;;  %v285_v35 = vld [vmem:[%s737_s6 + $0x10] sm:$0xff]  ;;  %v51_v37 = vld [vmem:[%s732_s1] sm:$0xff]  ;;  %v48_v42 = vld [vmem:[%s734_s3 + $0x8] sm:$0xff] }
  0x13   :  { %407 = vmatpush.xpose.msk.msra.mxu1 %vm157_vm1, %v42_v9  ;;  %v31_v38 = vld [vmem:[%s731_s0] sm:$0xff]  ;;  %v49_v41 = vld [vmem:[%s734_s3 + $0x10] sm:$0xff]  ;;  %v28_v43 = vld [vmem:[%s733_s2 + $0x8] sm:$0xff] }
  0x14   :  { %v47_v39 = vld [vmem:[%s734_s3] sm:$0xff]  ;;  %v50_v44 = vld [vmem:[%s734_s3 + $0x18] sm:$0xff]  ;;  %v29_v45 = vld [vmem:[%s733_s2 + $0x10] sm:$0xff] }
  0x15   :  { %253 = vperm.xlu1 %446, %v247_v24   ;;  %v27_v40 = vld [vmem:[%s733_s2] sm:$0xff]  ;;  %v30_v46 = vld [vmem:[%s733_s2 + $0x18] sm:$0xff]  ;;  %v284_v9 = vld [vmem:[%s737_s6 + $0x8] sm:$0xff] }
  0x16   :  { %388 = vmatpush.xpose.msk.msra.mxu0 %vm67_vm0, %v61_v10  ;;  %432 = vmatpush.xpose.msk.msra.mxu3 %vm67_vm0, %v61_v10  ;;  %v283_v3 = vld [vmem:[%s737_s6] sm:$0xff]  ;;  %v280_v10 = vld [vmem:[%s736_s5 + $0x8] sm:$0xff] }
  0x17   :  { %408 = vmatpush.xpose.msk.msra.mxu1 %vm157_vm1, %v41_v11  ;;  %263 = vperm.xlu0 %445, %v249_v30   ;;  %v279_v8 = vld [vmem:[%s736_s5] sm:$0xff]  ;;  %v281_v11 = vld [vmem:[%s736_s5 + $0x10] sm:$0xff] }
  0x18   :  { %289 = vperm.xlu2 %447, %v283_v3  }
  0x1a   :  { %389 = vmatpush.xpose.msk.msra.mxu0 %vm67_vm0, %v60_v12  ;;  %433 = vmatpush.xpose.msk.msra.mxu3 %vm67_vm0, %v60_v12  ;;  %v282_v12 = vld [vmem:[%s736_s5 + $0x18] sm:$0xff]  ;;  %s475_s5 = smov [#allocation2]  }
  0x1b   :  { %409 = vmatpush.xpose.msk.msra.mxu1 %vm157_vm1, %v40_v13  ;;  %s372_s6 = sshll.u32 %s475_s5, 4  ;;  %s373_s6 = int_to_ptr.vmem [resolvable:$true] %s372_s6 }
  0x1d   :  { %304 = vperm.xlu1 %446, %v286_v36  }
  0x1e   :  { %390 = vmatpush.xpose.msk.msra.mxu0 %vm67_vm0, %v59_v14  ;;  %434 = vmatpush.xpose.msk.msra.mxu3 %vm67_vm0, %v59_v14 }
  0x1f   :  { %410 = vmatpush.xpose.msk.msra.mxu1 %vm157_vm1, %v39_v15  ;;  %299 = vperm.xlu0 %445, %v285_v35  }
  0x20   :  { %294 = vperm.xlu2 %447, %v284_v9  }
  0x22   :  { %391 = vmatpush.xpose.msk.msra.mxu0 %vm67_vm0, %v58_v16  ;;  %435 = vmatpush.xpose.msk.msra.mxu3 %vm67_vm0, %v58_v16 }
  0x23   :  { %411 = vmatpush.xpose.msk.msra.mxu1 %vm157_vm1, %v38_v17 }
  0x26   :  { %392 = vmatpush.xpose.msk.msra.mxu0 %vm67_vm0, %v57_v19  ;;  %436 = vmatpush.xpose.msk.msra.mxu3 %vm67_vm0, %v57_v19 }
  0x27   :  { %412 = vmatpush.xpose.msk.msra.mxu1 %vm157_vm1, %v37_v20 }
  0x2a   :  { %393 = vmatpush.xpose.msk.msra.mxu0 %vm67_vm0, %v56_v22  ;;  %437 = vmatpush.xpose.msk.msra.mxu3 %vm67_vm0, %v56_v22 }
  0x2b   :  { %413 = vmatpush.xpose.msk.msra.mxu1 %vm157_vm1, %v36_v23 }
  0x2e   :  { %394 = vmatpush.xpose.msk.msra.mxu0 %vm67_vm0, %v55_v26  ;;  %438 = vmatpush.xpose.msk.msra.mxu3 %vm67_vm0, %v55_v26 }
  0x2f   :  { %414 = vmatpush.xpose.msk.msra.mxu1 %vm157_vm1, %v35_v27 }
  0x32   :  { %395 = vmatpush.xpose.msk.msra.mxu0 %vm67_vm0, %v54_v28  ;;  %439 = vmatpush.xpose.msk.msra.mxu3 %vm67_vm0, %v54_v28 }
  0x33   :  { %415 = vmatpush.xpose.msk.msra.mxu1 %vm157_vm1, %v34_v29 }
  0x36   :  { %396 = vmatpush.xpose.msk.msra.mxu0 %vm67_vm0, %v53_v31  ;;  %440 = vmatpush.xpose.msk.msra.mxu3 %vm67_vm0, %v53_v31 }
  0x37   :  { %416 = vmatpush.xpose.msk.msra.mxu1 %vm157_vm1, %v33_v32 }
  0x3a   :  { %397 = vmatpush.xpose.msk.msra.mxu0 %vm67_vm0, %v52_v33  ;;  %441 = vmatpush.xpose.msk.msra.mxu3 %vm67_vm0, %v52_v33 }
  0x3b   :  { %417 = vmatpush.xpose.msk.msra.mxu1 %vm157_vm1, %v32_v34 }
  0x3e   :  { %398 = vmatpush.xpose.msk.msra.mxu0 %vm67_vm0, %v51_v37  ;;  %442 = vmatpush.xpose.msk.msra.mxu3 %vm67_vm0, %v51_v37 }
  0x3f   :  { %418 = vmatpush.xpose.msk.msra.mxu1 %vm157_vm1, %v31_v38 }
  0x41   :  { %399 = vmatmul.msk.f32.vlgmr.msra.gmra.mxu0 %vm67_vm0, %v47_v39  ;;  %401 = vmatmul.msk.f32.vlgmr.msra.gmra.mxu3 %vm67_vm0, %v49_v41 }
  0x42   :  { %419 = vmatmul.msk.f32.vlgmr.msra.gmra.mxu1 %vm157_vm1, %v27_v40 }
  0x49   :  { %400 = vmatmul.msk.f32.gmra.mxu0 %vm67_vm0, %v48_v42  ;;  %402 = vmatmul.msk.f32.gmra.mxu3 %vm67_vm0, %v50_v44 }
  0x4a   :  { %420 = vmatmul.msk.f32.gmra.mxu1 %vm157_vm1, %v28_v43 }
  0x52   :  { %421 = vmatmul.msk.f32.gmra.mxu1 %vm157_vm1, %v29_v45 }
  0x5a   :  { %422 = vmatmul.msk.f32.gmra.mxu1 %vm157_vm1, %v30_v46 }
  0x72   :  { %v290_v14 = vpop.permute.xlu2 %289 }
  0x7a   :  { %v295_v16 = vpop.permute.xlu2 %294 }
  0x7f   :  { %v259_v53 = vpop.permute.xlu1 %258 }
  0x81   :  { %v269_v51 = vpop.permute.xlu0 %268 }
  0x87   :  { %v254_v0 = vpop.permute.xlu1 %253 }
  0x89   :  { %v264_v60 = vpop.permute.xlu0 %263 }
  0x8f   :  { %v305_v26 = vpop.permute.xlu1 %304 }
  0x91   :  { %v300_v18 = vpop.permute.xlu0 %299 }
  0xbe   :  { %v145_v49 = vpop.f32.mrf.mxu0 }
  0xbf   :  { %v235_v47 = vpop.f32.mrf.mxu1 }
  0xc0   :  { %v236_v61 = vadd.f32 %v235_v47, %v145_v49 }
  0xc2   :  { %v271_v4 = vadd.f32 %v254_v0, %v236_v61 }
  0xc4   :  { %v151_v50 = vpop.f32.mrf.mxu3  ;;  %v275_v7 = vmax.f32 %v271_v4, 0.0 }
  0xc6   :  { %v148_v54 = vpop.f32.mrf.mxu0 }
  0xc7   :  { %v238_v48 = vpop.f32.mrf.mxu1 }
  0xc8   :  { %v239_v58 = vadd.f32 %v238_v48, %v148_v54 }
  0xca   :  { %v272_v2 = vadd.f32 %v259_v53, %v239_v58 }
  0xcc   :  { %v154_v55 = vpop.f32.mrf.mxu3  ;;  %v276_v6 = vmax.f32 %v272_v2, 0.0 }
  0xcf   :  { %v241_v52 = vpop.f32.mrf.mxu1 }
  0xd0   :  { %v242_v56 = vadd.f32 %v241_v52, %v151_v50 }
  0xd2   :  { %v273_v63 = vadd.f32 %v264_v60, %v242_v56 }
  0xd4   :  { %v277_v5 = vmax.f32 %v273_v63, 0.0 }
  0xd7   :  { %v244_v57 = vpop.f32.mrf.mxu1 }
  0xd8   :  { %v245_v59 = vadd.f32 %v244_v57, %v154_v55 }
  0xda   :  { %v274_v62 = vadd.f32 %v269_v51, %v245_v59 }
  0xdc   :  { %v278_v1 = vmax.f32 %v274_v62, 0.0 }
  0xde   :  { %332 = vmatpush.msra.mxu2 %v278_v1 }
  0xe0   :  { %333 = vmatpush.msra.mxu2 %v277_v5 }
  0xe2   :  { %334 = vmatpush.msra.mxu2 %v276_v6 }
  0xe4   :  { %335 = vmatpush.msra.mxu2 %v275_v7 }
  0xe5   :  { %423 = vmatmul.msk.f32.vlgmr.msra.gmra.mxu2 %vm307_vm2, %v279_v8 }
  0xed   :  { %424 = vmatmul.msk.f32.gmra.mxu2 %vm307_vm2, %v280_v10 }
  0xf5   :  { %425 = vmatmul.msk.f32.gmra.mxu2 %vm307_vm2, %v281_v11 }
  0xfd   :  { %426 = vmatmul.msk.f32.gmra.mxu2 %vm307_vm2, %v282_v12 }
 0x168   :  { %v337_v13 = vpop.f32.mrf.mxu2 }
 0x169   :  { %v338_v20 = vadd.f32 %v337_v13, %v290_v14 }
 0x16b   :  { %v349_v23 = vmax.f32 %v338_v20, 0.0 }
 0x16d   :  { %v353_v28 = vmul.f32 %v349_v23, %v349_v23 }
 0x170   :  { %v340_v15 = vpop.f32.mrf.mxu2 }
 0x171   :  { %v341_v17 = vadd.f32 %v340_v15, %v295_v16 }
 0x173   :  { %v350_v22 = vmax.f32 %v341_v17, 0.0 }
 0x175   :  { %v354_v25 = vmul.f32 %v350_v22, %v350_v22 }
 0x177   :  { %v357_v31 = vadd.f32 %v354_v25, %v353_v28 }
 0x178   :  { %v343_v19 = vpop.f32.mrf.mxu2 }
 0x179   :  { %v344_v21 = vadd.f32 %v343_v19, %v300_v18 }
 0x17b   :  { %v351_v24 = vmax.f32 %v344_v21, 0.0 }
 0x17d   :  { %v355_v29 = vmul.f32 %v351_v24, %v351_v24 }
 0x17f   :  { %v358_v33 = vadd.f32 %v357_v31, %v355_v29 }
 0x180   :  { %v346_v27 = vpop.f32.mrf.mxu2 }
 0x181   :  { %v347_v30 = vadd.f32 %v346_v27, %v305_v26 }
 0x183   :  { %v352_v32 = vmax.f32 %v347_v30, 0.0 }
 0x185   :  { %v356_v34 = vmul.f32 %v352_v32, %v352_v32 }
 0x187   :  { %v359_v35 = vadd.f32 %v358_v33, %v356_v34 }
 0x189   :  { %v360_v36 = vrot.slane %v359_v35, 4 }
 0x18b   :  { %v361_v37 = vadd.f32 %v360_v36, %v359_v35 }
 0x18d   :  { %v362_v38 = vrot.slane %v361_v37, 2 }
 0x18f   :  { %v363_v39 = vadd.f32 %v362_v38, %v361_v37 }
 0x191   :  { %v364_v40 = vrot.slane %v363_v39, 1 }
 0x193   :  { %v365_v41 = vadd.f32 %v364_v40, %v363_v39 }
 0x195   :  { %366 = vst [vmem:[#allocation2] sm:$0x1] %v365_v41 }
 0x196   :  { %377 = dma.vmem_to_hbm [thread:$0]  %s373_s6, 16, %s375_s9, [#allocation3]  }
 0x197   :  { %472 = dma.done.wait [#allocation3], 16  }
 0x198   :  { %473 = vsyncadd [#allocation3], 4294967280 }
 0x199   :  { %382 = vsyncpa [#allocation3], 1 }

</bundles_post_ra>
